<compile_context>
chip_gen: v6e
topology: v6e:2x2x1
jax: 0.10.0
libtpu: 0.0.40
codegen_flags: <defaults>
</compile_context>

<pallas_src>
import functools
import math

import jax
import jax.numpy as jnp
from jax.experimental import pallas as pl
from jax.experimental.pallas import tpu as pltpu

EPS = 1e-10


def sru_kernel(x_ref, w_ref, b_ref, wg_ref, o_ref, *,
               gate_const, use_logit, inv_m1):
    # x_ref block: (TB, G, M) with M = (C//G)*H*W; params: (G, M), resident.
    x = x_ref[...].astype(jnp.float32)                       # (TB, G, M)
    g = x.shape[1]
    half = g // 2

    # --- GroupBatchnorm2d: per (n, g) mean / unbiased std over M elements ---
    mean = jnp.mean(x, axis=-1, keepdims=True)               # (TB, G, 1)
    diff = x - mean
    var = jnp.sum(diff * diff, axis=-1, keepdims=True) * inv_m1   # torch.std: unbiased
    std = jnp.sqrt(var)
    inv = pl.reciprocal(std + EPS, approx=False)             # EUP reciprocal, exact
    xn = diff * inv
    gn = xn * w_ref[...] + b_ref[...]                        # broadcast over TB

    # --- SRU gating: sigmoid(gn*wg) >= t  <=>  gn*wg >= logit(t)  (monotone) ---
    z = gn * wg_ref[...]
    if use_logit:
        info = z >= gate_const
    else:
        info = jax.nn.sigmoid(z) >= gate_const
    x1 = jnp.where(info, gn, 0.0)
    x2 = gn - x1                                             # exact complement

    # --- reconstruct: cross-add channel halves (== group halves, 8-aligned) ---
    out = jnp.concatenate(
        [x1[:, :half, :] + x2[:, half:, :],
         x1[:, half:, :] + x2[:, :half, :]],
        axis=1,
    )
    o_ref[...] = out.astype(o_ref.dtype)                     # one full-block store


def _pick_tb(n, per_n_bytes, target_bytes=2 << 20):
    """Largest divisor of n with block <= target bytes, keeping >=2 grid steps
    when possible so a v7x megacore grid has work for both TensorCores."""
    cap = max(1, target_bytes // max(per_n_bytes, 1))
    best = 1
    for tb in range(1, n + 1):
        if n % tb == 0 and tb <= cap and (n // tb >= 2 or n == 1):
            best = tb
    return best


def sru_forward(x, weight, bias, *, group_num=16, gate_threshold=0.5):
    """x: (N, C, H, W); weight/bias: (C,) GroupBatchnorm2d params."""
    N, C, H, W = x.shape
    G = group_num
    assert C >= G and C % G == 0 and G % 2 == 0
    CG = C // G
    HW = H * W
    M = CG * HW
    assert M > 1, "unbiased std needs more than one element per group"

    # Lane-dense data layout: (N, G, CG*HW), original dtype preserved for I/O.
    x3 = x.reshape(N, G, M)

    # Lane-dense parameter slabs (G, M): DMA once, stay resident in VMEM.
    wf = weight.astype(jnp.float32).reshape(G, CG, 1)
    bf = bias.astype(jnp.float32).reshape(G, CG, 1)
    wgf = (weight / jnp.sum(weight)).astype(jnp.float32).reshape(G, CG, 1)
    w_slab = jnp.broadcast_to(wf, (G, CG, HW)).reshape(G, M)
    b_slab = jnp.broadcast_to(bf, (G, CG, HW)).reshape(G, M)
    wg_slab = jnp.broadcast_to(wgf, (G, CG, HW)).reshape(G, M)

    per_n_bytes = G * M * x3.dtype.itemsize
    TB = _pick_tb(N, per_n_bytes)
    # TODO(synk): for very large C*H*W (block > ~8 MiB) add an HW-chunk grid
    # axis with sum/sumsq VMEM accumulators (pl.when finalize) to stay under
    # v7x's 64 MiB VMEM instead of loading a whole (G, CG*HW) slab.

    if 0.0 < gate_threshold < 1.0:
        use_logit = True
        gate_const = float(math.log(gate_threshold / (1.0 - gate_threshold)))
    else:
        use_logit = False
        gate_const = float(gate_threshold)

    kernel = functools.partial(
        sru_kernel,
        gate_const=gate_const,
        use_logit=use_logit,
        inv_m1=1.0 / (M - 1),
    )

    out = pl.pallas_call(
        kernel,
        out_shape=jax.ShapeDtypeStruct((N, G, M), x.dtype),
        grid_spec=pltpu.PrefetchScalarGridSpec(
            num_scalar_prefetch=0,
            grid=(N // TB,),
            in_specs=[
                pl.BlockSpec((TB, G, M), lambda n: (n, 0, 0)),
                pl.BlockSpec((G, M), lambda n: (0, 0)),
                pl.BlockSpec((G, M), lambda n: (0, 0)),
                pl.BlockSpec((G, M), lambda n: (0, 0)),
            ],
            out_specs=pl.BlockSpec((TB, G, M), lambda n: (n, 0, 0)),
        ),
        compiler_params=pltpu.CompilerParams(
            dimension_semantics=("parallel",),
        ),
    )(x3, w_slab, b_slab, wg_slab)

    return out.reshape(N, C, H, W)


def sru_ref(x, weight, bias, *, group_num=16, gate_threshold=0.5, eps=EPS):
    """Pure-JAX reference mirroring the PyTorch module semantics."""
    N, C, H, W = x.shape
    xv = x.reshape(N, group_num, -1)
    mean = xv.mean(axis=2, keepdims=True)
    std = jnp.std(xv, axis=2, keepdims=True, ddof=1)  # torch.std default: unbiased
    xn = ((xv - mean) / (std + eps)).reshape(N, C, H, W)
    gn = xn * weight.reshape(1, C, 1, 1) + bias.reshape(1, C, 1, 1)
    wg = (weight / jnp.sum(weight)).reshape(1, C, 1, 1)
    rew = jax.nn.sigmoid(gn * wg)
    info = rew >= gate_threshold
    x1 = jnp.where(info, gn, 0.0)
    x2 = jnp.where(~info, gn, 0.0)
    half = C // 2
    return jnp.concatenate(
        [x1[:, :half] + x2[:, half:], x1[:, half:] + x2[:, :half]], axis=1
    )


if __name__ == "__main__":
    # SRU(oup_channels=32, group_num=16, gate_treshold=0.5, torch_gn=False)
    N, C, H, W = 2, 32, 16, 16
    G = 16

    key = jax.random.PRNGKey(0)
    kx, kw = jax.random.split(key)
    x = jax.random.normal(kx, (N, C, H, W), dtype=jnp.float32)
    weight = jax.random.normal(kw, (C,), dtype=jnp.float32)   # ~ torch.randn(C,1,1)
    bias = jnp.zeros((C,), dtype=jnp.float32)                 # torch.zeros(C,1,1)

    out = sru_forward(x, weight, bias, group_num=G, gate_threshold=0.5)
    out = jax.block_until_ready(out)

    ref = sru_ref(x, weight, bias, group_num=G, gate_threshold=0.5)
    assert out.shape == (N, C, H, W)
    assert jnp.allclose(out, ref, atol=1e-4, rtol=1e-4), "mismatch vs reference"

    print("KERNEL_OK")
</pallas_src>

<mosaic_0001>
module attributes {stable_mosaic.version = 11 : i64} {
  func.func @sru_kernel(%arg0: i32, %arg1: memref<1x16x512xf32, #tpu.memory_space<vmem>>, %arg2: memref<16x512xf32, #tpu.memory_space<vmem>>, %arg3: memref<16x512xf32, #tpu.memory_space<vmem>>, %arg4: memref<16x512xf32, #tpu.memory_space<vmem>>, %arg5: memref<1x16x512xf32, #tpu.memory_space<vmem>>) attributes {dimension_semantics = [#tpu.dimension_semantics<parallel>], iteration_bounds = array<i64: 2>, scalar_prefetch = 0 : i64, scratch_operands = 0 : i64, tpu.core_type = #tpu.core_type<tc>, window_params = [{transform_indices = @transform_0, window_bounds = array<i64: 1, 16, 512>}, {pipeline_mode = #tpu.pipeline_mode<synchronous>, transform_indices = @transform_1, window_bounds = array<i64: 16, 512>}, {pipeline_mode = #tpu.pipeline_mode<synchronous>, transform_indices = @transform_2, window_bounds = array<i64: 16, 512>}, {pipeline_mode = #tpu.pipeline_mode<synchronous>, transform_indices = @transform_3, window_bounds = array<i64: 16, 512>}, {transform_indices = @transform_4, window_bounds = array<i64: 1, 16, 512>}]} {
    %c0 = arith.constant 0 : index
    %c0_0 = arith.constant 0 : index
    %c0_1 = arith.constant 0 : index
    %0 = vector.load %arg1[%c0, %c0_0, %c0_1] : memref<1x16x512xf32, #tpu.memory_space<vmem>>, vector<1x16x512xf32>
    %cst = arith.constant dense<0.000000e+00> : vector<1x16xf32>
    %1 = vector.multi_reduction <add>, %0, %cst [2] : vector<1x16x512xf32> to vector<1x16xf32>
    %2 = vector.shape_cast %1 : vector<1x16xf32> to vector<1x16x1xf32>
    %cst_2 = arith.constant 5.120000e+02 : f32
    %3 = vector.broadcast %cst_2 : f32 to vector<1x16x1xf32>
    %4 = arith.divf %2, %3 : vector<1x16x1xf32>
    %5 = vector.broadcast %4 : vector<1x16x1xf32> to vector<1x16x512xf32>
    %6 = arith.subf %0, %5 : vector<1x16x512xf32>
    %7 = arith.mulf %6, %6 : vector<1x16x512xf32>
    %cst_3 = arith.constant dense<0.000000e+00> : vector<1x16xf32>
    %8 = vector.multi_reduction <add>, %7, %cst_3 [2] : vector<1x16x512xf32> to vector<1x16xf32>
    %9 = vector.shape_cast %8 : vector<1x16xf32> to vector<1x16x1xf32>
    %cst_4 = arith.constant 0.00195694715 : f32
    %10 = vector.broadcast %cst_4 : f32 to vector<1x16x1xf32>
    %11 = arith.mulf %9, %10 : vector<1x16x1xf32>
    %12 = math.sqrt %11 : vector<1x16x1xf32>
    %cst_5 = arith.constant 1.000000e-10 : f32
    %13 = vector.broadcast %cst_5 : f32 to vector<1x16x1xf32>
    %14 = arith.addf %12, %13 : vector<1x16x1xf32>
    %15 = tpu.reciprocal %14 : vector<1x16x1xf32> -> vector<1x16x1xf32>
    %16 = vector.broadcast %15 : vector<1x16x1xf32> to vector<1x16x512xf32>
    %17 = arith.mulf %6, %16 : vector<1x16x512xf32>
    %c0_6 = arith.constant 0 : index
    %c0_7 = arith.constant 0 : index
    %18 = vector.load %arg2[%c0_6, %c0_7] : memref<16x512xf32, #tpu.memory_space<vmem>>, vector<16x512xf32>
    %19 = vector.shape_cast %18 : vector<16x512xf32> to vector<1x16x512xf32>
    %20 = arith.mulf %17, %19 : vector<1x16x512xf32>
    %c0_8 = arith.constant 0 : index
    %c0_9 = arith.constant 0 : index
    %21 = vector.load %arg3[%c0_8, %c0_9] : memref<16x512xf32, #tpu.memory_space<vmem>>, vector<16x512xf32>
    %22 = vector.shape_cast %21 : vector<16x512xf32> to vector<1x16x512xf32>
    %23 = arith.addf %20, %22 : vector<1x16x512xf32>
    %c0_10 = arith.constant 0 : index
    %c0_11 = arith.constant 0 : index
    %24 = vector.load %arg4[%c0_10, %c0_11] : memref<16x512xf32, #tpu.memory_space<vmem>>, vector<16x512xf32>
    %25 = vector.shape_cast %24 : vector<16x512xf32> to vector<1x16x512xf32>
    %26 = arith.mulf %23, %25 : vector<1x16x512xf32>
    %cst_12 = arith.constant 0.000000e+00 : f32
    %27 = vector.broadcast %cst_12 : f32 to vector<1x16x512xf32>
    %28 = arith.cmpf oge, %26, %27 : vector<1x16x512xf32>
    %cst_13 = arith.constant 0.000000e+00 : f32
    %29 = vector.broadcast %cst_13 : f32 to vector<1x16x512xf32>
    %30 = arith.select %28, %23, %29 : vector<1x16x512xi1>, vector<1x16x512xf32>
    %31 = arith.subf %23, %30 : vector<1x16x512xf32>
    %32 = vector.extract_strided_slice %30 {offsets = [0, 0, 0], sizes = [1, 8, 512], strides = [1, 1, 1]} : vector<1x16x512xf32> to vector<1x8x512xf32>
    %33 = vector.extract_strided_slice %31 {offsets = [0, 8, 0], sizes = [1, 8, 512], strides = [1, 1, 1]} : vector<1x16x512xf32> to vector<1x8x512xf32>
    %34 = arith.addf %32, %33 : vector<1x8x512xf32>
    %35 = vector.extract_strided_slice %30 {offsets = [0, 8, 0], sizes = [1, 8, 512], strides = [1, 1, 1]} : vector<1x16x512xf32> to vector<1x8x512xf32>
    %36 = vector.extract_strided_slice %31 {offsets = [0, 0, 0], sizes = [1, 8, 512], strides = [1, 1, 1]} : vector<1x16x512xf32> to vector<1x8x512xf32>
    %37 = arith.addf %35, %36 : vector<1x8x512xf32>
    %38 = tpu.concatenate %34, %37 in 1 : vector<1x8x512xf32>, vector<1x8x512xf32> -> vector<1x16x512xf32>
    %c0_14 = arith.constant 0 : index
    %c0_15 = arith.constant 0 : index
    %c0_16 = arith.constant 0 : index
    %39 = vector.load %arg5[%c0_14, %c0_15, %c0_16] : memref<1x16x512xf32, #tpu.memory_space<vmem>>, vector<1x16x512xf32>
    tpu.vector_store %arg5[%c0_14, %c0_15, %c0_16], %38 {strides = array<i32>} : memref<1x16x512xf32, #tpu.memory_space<vmem>>, vector<1x16x512xf32>,
    return
  }
  func.func @transform_0(%arg0: i32) -> (i32, i32, i32) {
    %c0_i32 = arith.constant 0 : i32
    %c0_i32_0 = arith.constant 0 : i32
    %c0_i32_1 = arith.constant 0 : i32
    return %arg0, %c0_i32, %c0_i32_0 : i32, i32, i32
  }
  func.func @transform_1(%arg0: i32) -> (i32, i32) {
    %c0_i32 = arith.constant 0 : i32
    %c0_i32_0 = arith.constant 0 : i32
    %c0_i32_1 = arith.constant 0 : i32
    return %c0_i32, %c0_i32_0 : i32, i32
  }
  func.func @transform_2(%arg0: i32) -> (i32, i32) {
    %c0_i32 = arith.constant 0 : i32
    %c0_i32_0 = arith.constant 0 : i32
    %c0_i32_1 = arith.constant 0 : i32
    return %c0_i32, %c0_i32_0 : i32, i32
  }
  func.func @transform_3(%arg0: i32) -> (i32, i32) {
    %c0_i32 = arith.constant 0 : i32
    %c0_i32_0 = arith.constant 0 : i32
    %c0_i32_1 = arith.constant 0 : i32
    return %c0_i32, %c0_i32_0 : i32, i32
  }
  func.func @transform_4(%arg0: i32) -> (i32, i32, i32) {
    %c0_i32 = arith.constant 0 : i32
    %c0_i32_0 = arith.constant 0 : i32
    %c0_i32_1 = arith.constant 0 : i32
    return %arg0, %c0_i32, %c0_i32_0 : i32, i32, i32
  }
}

</mosaic_0001>

<bundles_post_ra>
// kernel: tpu_custom_call.1
= control target key start
LH: loop header
LB: loop body
LE: loop exit
PB: predicated region body
PF: predicated region fallthrough
CT: control target
= control target key end

     0   :  { %9 = vsyncpa [#allocation3], 0  ;;  %s1095_s0 = inlined_call_operand.hbm [shape: f32[2,16,512], index: 0, kind: input, shape index: {}]   ;;  %s1096_s1 = inlined_call_operand.hbm [shape: f32[16,512], index: 1, kind: input, shape index: {}]   ;;  %s1097_s2 = inlined_call_operand.hbm [shape: f32[16,512], index: 2, kind: input, shape index: {}]   ;;  %s1098_s3 = inlined_call_operand.hbm [shape: f32[16,512], index: 3, kind: input, shape index: {}]   ;;  %s1099_s4 = inlined_call_operand.hbm [shape: f32[2,16,512], index: 4, kind: output, shape index: {}]  }
   0x1   :  { %11 = vsyncpa [#allocation3 + $0x1], 0 }
   0x2   :  { %12 = vsyncpa [#allocation6], 0 }
   0x3   :  { %13 = vsyncpa [#allocation9], 0 }
   0x4   :  { %14 = vsyncpa [#allocation4], 0 }
   0x5   :  { %16 = vsyncpa [#allocation4 + $0x1], 0  ;;  %s864_s15 = smov 0   ;;  %s866_s16 = smov 0  }
   0x6   :  { %s868_s17 = smov 0   ;;  %s870_s18 = smov 0  }
   0x7 LB: > { %s885_s19 = sadd.s32 4294967295, %s828_s18   ;;  %s539_s20 = sadd.s32 4294967294, %s828_s18   ;;  %s828_s18 = sphi %s870_s18, %s1122_s18   ;;  %s824_s17 = sphi %s868_s17, %s1121_s17   ;;  %s820_s16 = sphi %s866_s16, %s1120_s16   ;;  %s816_s15 = sphi %s864_s15, %s1119_s15  }
   0x8   : > { %p42_p0 = scmp.ne.s32.totalorder %s820_s16, %s816_s15  ;;  %p1100_p1 = scmp.eq.s32.totalorder %s885_s19, 0 }
   0x9   : > { %p129_p2 = scmp.eq.s32.totalorder %s885_s19, 1  ;;  %p135_p3 = scmp.eq.s32.totalorder %s539_s20, 1 }
   0xa   : > { %p894_p4 = por %p1100_p1, %p42_p0  ;;  %p540_p5 = scmp.ge.s32.totalorder %s828_s18, 1 }
   0xb   : > { %p899_p6 = por %p135_p3, %p42_p0  ;;  %p142_p7 = scmp.lt.s32.totalorder %s828_s18, 3 }
   0xc   : > { %s1104_s21 = scalar_select %p894_p4, 1, 0 }
   0xd   : > { %s1105_s22 = scalar_select %p899_p6, 1, 0 }
   0xe   : > { %p904_p8 = pnand %p540_p5, %p142_p7  ;;  %s830_s24 = smov [#allocation5]  }
   0xf   : > { %s154_s25 = sshll.u32 %s830_s24, 4  ;;  %s831_s27 = smov [#allocation7]   ;;  %s155_s25 = int_to_ptr.vmem [resolvable:$true] %s154_s25 }
  0x10   : > { %s1106_s23 = scalar_select %p904_p8, 1, 0 }
  0x11   : > { %p577_p9 = pneg %p904_p8  ;;  %s167_s28 = sshll.u32 %s831_s27, 4  ;;  %s168_s28 = int_to_ptr.vmem [resolvable:$true] %s167_s28 }
  0x12   : > { %s832_s29 = smov [#allocation8]   ;;  %s661_s5 = scalar_lea.vmem %s155_s25, 1024 }
  0x13   : > { %p913_p11 = pnand %p577_p9, %p1100_p1  ;;  %s180_s30 = sshll.u32 %s832_s29, 4  ;;  %s181_s30 = int_to_ptr.vmem [resolvable:$true] %s180_s30 }
  0x14   : > { %p662_p13 = scmp.ne.s32.totalorder %s155_s25, %s661_s5  ;;  %p669_p5 = scmp.lt.s32.totalorder %s155_s25, %s155_s25 }
  0x15   : > { %p652_p12 = pneg %p913_p11  ;;  %p670_p7 = scmp.lt.s32.totalorder %s661_s5, %s661_s5 }
  0x17   : > { %p664_p0 = pnand %p662_p13, %p652_p12  ;;  %p671_p9 = por %p670_p7, %p669_p5 }
  0x19   : > { %p665_p3 = pneg %p664_p0 }
  0x1b   : > { %p672_p10 = pnand %p671_p9, %p665_p3 }
  0x1d   : > { %675 = shalt.err (!%p672_p10)
}
  0x1e   : > { %s833_s6 = smov 512   ;;  %s834_s7 = smov 32  }
  0x1f   : > { %580 = dma.hbm_to_vmem [thread:$0]  (!%p913_p11), %s1096_s1, 1024, %s155_s25, [#allocation6], %s833_s6, %s833_s6, %s834_s7  }
  0x20   : > { %s687_s10 = scalar_lea.vmem %s168_s28, 1024  ;;  %p695_p3 = scmp.lt.s32.totalorder %s168_s28, %s168_s28 }
  0x21   : > { %p688_p13 = scmp.ne.s32.totalorder %s168_s28, %s687_s10  ;;  %p696_p10 = scmp.lt.s32.totalorder %s687_s10, %s687_s10 }
  0x23   : > { %p690_p0 = pnand %p688_p13, %p652_p12  ;;  %p697_p7 = por %p696_p10, %p695_p3 }
  0x25   : > { %p691_p5 = pneg %p690_p0 }
  0x27   : > { %p698_p9 = pnand %p697_p7, %p691_p5 }
  0x29   : > { %701 = shalt.err (!%p698_p9)
}
  0x2a   : > { %583 = dma.hbm_to_vmem [thread:$0]  (!%p913_p11), %s1097_s2, 1024, %s168_s28, [#allocation6], %s833_s6, %s833_s6, %s834_s7  }
  0x2b   : > { %s713_s13 = scalar_lea.vmem %s181_s30, 1024  ;;  %p721_p3 = scmp.lt.s32.totalorder %s181_s30, %s181_s30 }
  0x2c   : > { %p714_p1 = scmp.ne.s32.totalorder %s181_s30, %s713_s13  ;;  %p722_p5 = scmp.lt.s32.totalorder %s713_s13, %s713_s13 }
  0x2e   : > { %p716_p13 = pnand %p714_p1, %p652_p12  ;;  %p723_p10 = por %p722_p5, %p721_p3 }
  0x30   : > { %p717_p0 = pneg %p716_p13 }
  0x32   : > { %p724_p7 = pnand %p723_p10, %p717_p0 }
  0x34   : > { %727 = shalt.err (!%p724_p7)
}
  0x35   : > { %586 = dma.hbm_to_vmem [thread:$0]  (!%p913_p11), %s1098_s3, 1024, %s181_s30, [#allocation9], %s833_s6, %s833_s6, %s834_s7  }
  0x36   : > { %s953_s24 = sadd.s32 1, %s828_s18   ;;  %s29_s26 = sadd.s32 1, %s824_s17 }
  0x37   : > { %s26_s25 = ssub.s32 %s828_s18, %s953_s24  ;;  %p36_p12 = scmp.ne.s32.totalorder %s824_s17, %s820_s16 }
  0x38   : > { %p27_p1 = scmp.eq.s32.totalorder %s26_s25, 0  ;;  %p37_p9 = scmp.eq.s32.totalorder %s828_s18, 0 }
  0x39   : > { %p598_p13 = scmp.lt.s32.totalorder %s828_s18, 2  ;;  %p967_p3 = por %p129_p2, %p36_p12 }
  0x3a   : > { %s963_s27 = scalar_select %p27_p1, %s824_s17, %s29_s26  }
  0x3b   : > { %p38_p0 = por %p37_p9, %p36_p12  ;;  %s194_s29 = sand.u32 1, %s824_s17  }
  0x3c   : > { %s1108_s28 = scalar_select %p967_p3, 1, 0 }
  0x3d   : > { %s559_s5 = sshll.u32 %s828_s18, 10  ;;  %s545_s30 = sshll.u32 %s194_s29, 6 }
  0x3e   : > { %s976_s10 = scalar_lea.hbm %s1095_s0, %s559_s5  ;;  %s198_s11 = scalar_lea.vmem [#allocation2], %s545_s30 }
  0x3f   : > { %s205_s12 = sshll.u32 %s198_s11, 4  ;;  %p978_p11 = pnand %p598_p13, %p38_p0  ;;  %s982_s12 = int_to_ptr.vmem [resolvable:$true] %s205_s12 }
  0x40   : > { %s984_s14 = scalar_lea.sflag [#allocation3], %s194_s29  ;;  %s728_s20 = scalar_lea.hbm %s976_s10, 1024 }
  0x41   : > { %p729_p2 = scmp.ne.s32.totalorder %s976_s10, %s728_s20  ;;  %p730_p5 = pneg %p978_p11 }
  0x42   : > { %s733_s5 = scalar_lea.hbm %s1095_s0, 2048  ;;  %p734_p1 = scmp.lt.s32.totalorder %s976_s10, %s1095_s0 }
  0x43   : > { %p731_p10 = pnand %p730_p5, %p729_p2  ;;  %p735_p12 = scmp.lt.s32.totalorder %s733_s5, %s728_s20 }
  0x45   : > { %p732_p7 = pneg %p731_p10  ;;  %p736_p9 = por %p735_p12, %p734_p1 }
  0x47   : > { %p737_p13 = pnand %p736_p9, %p732_p7 }
  0x49   : > { %740 = shalt.err (!%p737_p13)
}
  0x4a   : > { %s741_s29 = scalar_lea.vmem %s982_s12, 1024  ;;  %s835_s9 = smov [#allocation2]  }
  0x4b   : > { %p742_p0 = scmp.ne.s32.totalorder %s982_s12, %s741_s29  ;;  %s746_s11 = sshll.u32 %s835_s9, 4  ;;  %s747_s11 = int_to_ptr.vmem [resolvable:$false] %s746_s11 }
  0x4c   : > { %s748_s25 = scalar_lea.vmem %s747_s11, 2048  ;;  %p749_p10 = scmp.lt.s32.totalorder %s982_s12, %s747_s11 }
  0x4d   : > { %p744_p6 = pnand %p742_p0, %p730_p5  ;;  %p750_p3 = scmp.lt.s32.totalorder %s748_s25, %s741_s29 }
  0x4f   : > { %p745_p2 = pneg %p744_p6  ;;  %p751_p4 = por %p750_p3, %p749_p10 }
  0x51   : > { %p752_p8 = pnand %p751_p4, %p745_p2 }
  0x53   : > { %755 = shalt.err (!%p752_p8)
}
  0x54   : > { %590 = dma.hbm_to_vmem [thread:$0]  (!%p978_p11), %s976_s10, 1024, %s982_s12, %s984_s14, %s833_s6, %s833_s6, %s834_s7  }
  0x55   : > { %p1110_p6 = scmp.ne.s32.totalorder %s1106_s23, 0 }
  0x56   : > { %s1011_s20 = sand.u32 (!%p1110_p6), 1, %s820_s16   ;;  %p1111_p4 = scmp.ne.s32.totalorder (!%p1110_p6), %s1104_s21, 0 }
  0x57   : > { %217 = sbr.rel (%p1110_p6) target bundleno = 466 (0x1d2), region = 36  ;;  %s549_s26 = sshll.u32 (!%p1110_p6), %s1011_s20, 6 }
  0x58   : > { %s220_s5 = scalar_lea.sflag (!%p1110_p6), [#allocation3], %s1011_s20  ;;  %s223_s13 = scalar_lea.vmem (!%p1110_p6), [#allocation2], %s549_s26 }
  0x5c   : > { %799 = dma.done.wait (%p1111_p4), %s220_s5, 1024  }
  0x5d   : > { %801 = vsyncadd (%p1111_p4), %s220_s5, 4294966272  ;;  %p1112_p8 = scmp.eq.s32.totalorder %s885_s19, 0 }
  0x5f   : > { %803 = dma.done.wait (%p1112_p8), [#allocation6], 2048   ;;  %p1113_p3 = pmov %p1112_p8 }
  0x61   : > { %805 = vsyncadd (%p1113_p3), [#allocation6], 4294965248  ;;  %p1114_p11 = pmov %p1113_p3 }
  0x62   : > { %p1115_p5 = pmov %p1113_p3 }
  0x63   : > { %807 = dma.done.wait (%p1114_p11), [#allocation9], 1024  }
  0x64   : > { %809 = vsyncadd (%p1115_p5), [#allocation9], 4294966272  ;;  %v260_v0 = vld [vmem:[%s223_s13] sm:$0xff]  ;;  %v261_v1 = vld [vmem:[%s223_s13 + $0x8] sm:$0xff]  ;;  %s560_s21 = sshll.u32 %s885_s19, 10  ;;  %s259_s23 = scalar_lea.vmem [#allocation10], %s549_s26 }
  0x65   : > { %v262_v2 = vld [vmem:[%s223_s13 + $0x10] sm:$0xff]  ;;  %v268_v3 = vadd.f32 %v261_v1, %v260_v0  ;;  %v264_v4 = vld [vmem:[%s223_s13 + $0x20] sm:$0xff]  ;;  %v265_v5 = vld [vmem:[%s223_s13 + $0x28] sm:$0xff]  ;;  %s437_s6 = sshll.u32 %s259_s23, 4  ;;  %s1050_s19 = scalar_lea.hbm %s1099_s4, %s560_s21  ;;  %s1052_s6 = int_to_ptr.vmem [resolvable:$true] %s437_s6 }
  0x66   : > { %v263_v6 = vld [vmem:[%s223_s13 + $0x18] sm:$0xff]  ;;  %v266_v7 = vld [vmem:[%s223_s13 + $0x30] sm:$0xff]  ;;  %v273_v8 = vadd.f32 %v265_v5, %v264_v4  ;;  %v335_v56 = vld [vmem:[#allocation5] sm:$0xff]  ;;  %s424_s12 = scalar_lea.sflag [#allocation4], %s1011_s20  ;;  %s756_s14 = scalar_lea.vmem %s1052_s6, 1024 }
  0x67   : > { %v269_v9 = vadd.f32 %v268_v3, %v262_v2  ;;  %v267_v10 = vld [vmem:[%s223_s13 + $0x38] sm:$0xff]  ;;  %v336_v58 = vld [vmem:[#allocation5 + $0x8] sm:$0xff]  ;;  %v337_v59 = vld [vmem:[#allocation5 + $0x10] sm:$0xff]  ;;  %p757_p7 = scmp.ne.s32.totalorder %s1052_s6, %s756_s14  ;;  %p1116_p1 = scmp.ne.s32.totalorder %s1108_s28, 0 }
  0x68   : > { %v274_v11 = vadd.f32 %v273_v8, %v266_v7  ;;  %v338_v60 = vld [vmem:[#allocation5 + $0x18] sm:$0xff]  ;;  %v341_v3 = vld [vmem:[#allocation5 + $0x30] sm:$0xff]  ;;  %s836_s30 = smov [#allocation10]  }
  0x69   : > { %v270_v12 = vadd.f32 %v269_v9, %v263_v6  ;;  %v352_v9 = vld [vmem:[#allocation7 + $0x8] sm:$0xff]  ;;  %p758_p12 = pnand %p757_p7, %p1116_p1  ;;  %s760_s8 = sshll.u32 %s836_s30, 4  ;;  %s761_s8 = int_to_ptr.vmem [resolvable:$false] %s760_s8 }
  0x6a   : > { %v275_v13 = vadd.f32 %v274_v11, %v267_v10  ;;  %v354_v11 = vld [vmem:[#allocation7 + $0x18] sm:$0xff]  ;;  %s762_s29 = scalar_lea.vmem %s761_s8, 2048  ;;  %p763_p13 = scmp.lt.s32.totalorder %s1052_s6, %s761_s8 }
  0x6b   : > { %271 = vadd.xlane.f32.xlu0 %v270_v12  ;;  %p759_p9 = pneg %p758_p12  ;;  %p764_p0 = scmp.lt.s32.totalorder %s762_s29, %s756_s14 }
  0x6d   : > { %p765_p2 = por %p764_p0, %p763_p13 }
  0x6f   : > { %276 = vadd.xlane.f32.xlu0 %v275_v13  ;;  %v342_v13 = vld [vmem:[#allocation5 + $0x38] sm:$0xff]  ;;  %p766_p10 = pnand %p765_p2, %p759_p9 }
  0xf4   : > { %v272_v14 = vpop.xlane.xlu0 %271 }
  0xf5   : > { %v279_v15 = vmul.f32 0.001953125, %v272_v14  ;;  %v355_v14 = vld [vmem:[#allocation7 + $0x20] sm:$0xff] }
  0xf7   : > { %v281_v16 = vsub.f32 %v260_v0, %v279_v15  ;;  %v282_v17 = vsub.f32 %v261_v1, %v279_v15  ;;  %v283_v18 = vsub.f32 %v262_v2, %v279_v15  ;;  %v284_v20 = vsub.f32 %v263_v6, %v279_v15  ;;  %v339_v1 = vld [vmem:[#allocation5 + $0x20] sm:$0xff]  ;;  %v340_v2 = vld [vmem:[#allocation5 + $0x28] sm:$0xff] }
  0xf8   : > { %v277_v19 = vpop.xlane.xlu0 %276  ;;  %v367_v15 = vld [vmem:[#allocation8] sm:$0xff] }
  0xf9   : > { %v280_v21 = vmul.f32 0.001953125, %v277_v19  ;;  %v289_v22 = vmul.f32 %v281_v16, %v281_v16  ;;  %v290_v23 = vmul.f32 %v282_v17, %v282_v17  ;;  %v291_v24 = vmul.f32 %v283_v18, %v283_v18 }
  0xfa   : > { %v292_v29 = vmul.f32 %v284_v20, %v284_v20 }
  0xfb   : > { %v1029_v25 = vsub.f32 %v264_v4, %v280_v21  ;;  %v1031_v26 = vsub.f32 %v265_v5, %v280_v21  ;;  %v297_v27 = vadd.f32 %v290_v23, %v289_v22  ;;  %v1033_v28 = vsub.f32 %v266_v7, %v280_v21  ;;  %v351_v4 = vld [vmem:[#allocation7] sm:$0xff]  ;;  %v370_v22 = vld [vmem:[#allocation8 + $0x18] sm:$0xff]  ;;  %v356_v23 = vld [vmem:[#allocation7 + $0x28] sm:$0xff] }
  0xfc   : > { %v288_v31 = vsub.f32 %v267_v10, %v280_v21  ;;  %v353_v10 = vld [vmem:[#allocation7 + $0x10] sm:$0xff] }
  0xfd   : > { %v298_v30 = vadd.f32 %v297_v27, %v291_v24  ;;  %v293_v32 = vmul.f32 %v1029_v25, %v1029_v25  ;;  %v294_v33 = vmul.f32 %v1031_v26, %v1031_v26  ;;  %v295_v35 = vmul.f32 %v1033_v28, %v1033_v28  ;;  %v369_v21 = vld [vmem:[#allocation8 + $0x10] sm:$0xff]  ;;  %v358_v27 = vld [vmem:[#allocation7 + $0x38] sm:$0xff] }
  0xfe   : > { %v296_v37 = vmul.f32 %v288_v31, %v288_v31  ;;  %v357_v24 = vld [vmem:[#allocation7 + $0x30] sm:$0xff] }
  0xff   : > { %v299_v34 = vadd.f32 %v298_v30, %v292_v29  ;;  %v302_v36 = vadd.f32 %v294_v33, %v293_v32 }
 0x101   : > { %300 = vadd.xlane.f32.xlu1 %v299_v34  ;;  %v303_v38 = vadd.f32 %v302_v36, %v295_v35 }
 0x103   : > { %v304_v39 = vadd.f32 %v303_v38, %v296_v37  ;;  %v372_v38 = vld [vmem:[#allocation8 + $0x28] sm:$0xff] }
 0x105   : > { %305 = vadd.xlane.f32.xlu1 %v304_v39  ;;  %v374_v39 = vld [vmem:[#allocation8 + $0x38] sm:$0xff] }
 0x18a   : > { %v301_v40 = vpop.xlane.xlu1 %300 }
 0x18b   : > { %v307_v41 = vmul.f32 0.0019569471, %v301_v40 }
 0x18d   : > { %642 = vrsqrt.f32 %v307_v41  ;;  %vm311_vm0 = vcmp.eq.f32.partialorder %v307_v41, inf  ;;  %v314_v46 = vand.u32 2147483648, %v307_v41  ;;  %vm313_vm1 = vcmp.eq.f32.partialorder %v307_v41, 0.0 }
 0x18e   : > { %v306_v42 = vpop.xlane.xlu1 %305 }
 0x18f   : > { %v308_v43 = vmul.f32 0.0019569471, %v306_v42 }
 0x191   : > { %644 = vrsqrt.f32 %v308_v43  ;;  %vm318_vm2 = vcmp.eq.f32.partialorder %v308_v43, inf  ;;  %v321_v52 = vand.u32 2147483648, %v308_v43  ;;  %vm320_vm3 = vcmp.eq.f32.partialorder %v308_v43, 0.0 }
 0x19a   : > { %v643_v44 = vpop.eup %642 }
 0x19b   : > { %v310_v45 = vmul.f32 %v643_v44, %v307_v41 }
 0x19d   : > { %v312_v47 = vsel %vm311_vm0, %v307_v41, %v310_v45 }
 0x19e   : > { %v645_v48 = vpop.eup %644  ;;  %v315_v49 = vsel %vm313_vm1, %v314_v46, %v312_v47 }
 0x19f   : > { %v323_v50 = vadd.f32 1e-10, %v315_v49  ;;  %v317_v51 = vmul.f32 %v645_v48, %v308_v43 }
 0x1a1   : > { %646 = vrcp.f32 %v323_v50  ;;  %v319_v53 = vsel %vm318_vm2, %v308_v43, %v317_v51 }
 0x1a2   : > { %v322_v54 = vsel %vm320_vm3, %v321_v52, %v319_v53 }
 0x1a3   : > { %v324_v55 = vadd.f32 1e-10, %v322_v54 }
 0x1a5   : > { %648 = vrcp.f32 %v324_v55 }
 0x1ae   : > { %v647_v57 = vpop.eup %646 }
 0x1af   : > { %v327_v61 = vmul.f32 %v647_v57, %v281_v16  ;;  %v328_v62 = vmul.f32 %v647_v57, %v282_v17  ;;  %v329_v63 = vmul.f32 %v647_v57, %v283_v18  ;;  %v330_v0 = vmul.f32 %v647_v57, %v284_v20  ;;  %v368_v20 = vld [vmem:[#allocation8 + $0x8] sm:$0xff] }
 0x1b1   : > { %v343_v5 = vmul.f32 %v335_v56, %v327_v61  ;;  %v344_v6 = vmul.f32 %v336_v58, %v328_v62  ;;  %v345_v7 = vmul.f32 %v337_v59, %v329_v63  ;;  %v346_v8 = vmul.f32 %v338_v60, %v330_v0 }
 0x1b2   : > { %v649_v12 = vpop.eup %648 }
 0x1b3   : > { %v331_v16 = vmul.f32 %v649_v12, %v1029_v25  ;;  %v332_v17 = vmul.f32 %v649_v12, %v1031_v26  ;;  %v333_v18 = vmul.f32 %v649_v12, %v1033_v28  ;;  %v334_v19 = vmul.f32 %v649_v12, %v288_v31  ;;  %v371_v25 = vld [vmem:[#allocation8 + $0x20] sm:$0xff]  ;;  %v373_v26 = vld [vmem:[#allocation8 + $0x30] sm:$0xff] }
 0x1b4   : > { %v359_v29 = vadd.f32 %v351_v4, %v343_v5  ;;  %v360_v30 = vadd.f32 %v352_v9, %v344_v6  ;;  %v361_v32 = vadd.f32 %v353_v10, %v345_v7  ;;  %v362_v33 = vadd.f32 %v354_v11, %v346_v8 }
 0x1b5   : > { %v347_v34 = vmul.f32 %v339_v1, %v331_v16  ;;  %v348_v35 = vmul.f32 %v340_v2, %v332_v17  ;;  %v349_v36 = vmul.f32 %v341_v3, %v333_v18  ;;  %v350_v37 = vmul.f32 %v342_v13, %v334_v19 }
 0x1b6   : > { %v375_v28 = vmul.f32 %v367_v15, %v359_v29  ;;  %v376_v31 = vmul.f32 %v368_v20, %v360_v30  ;;  %v377_v40 = vmul.f32 %v369_v21, %v361_v32  ;;  %v378_v41 = vmul.f32 %v370_v22, %v362_v33 }
 0x1b7   : > { %v363_v42 = vadd.f32 %v355_v14, %v347_v34  ;;  %v364_v43 = vadd.f32 %v356_v23, %v348_v35  ;;  %v365_v44 = vadd.f32 %v357_v24, %v349_v36  ;;  %v366_v45 = vadd.f32 %v358_v27, %v350_v37 }
 0x1b8   : > { %vm383_vm4 = vcmp.ge.f32.partialorder %v375_v28, 0.0  ;;  %vm384_vm5 = vcmp.ge.f32.partialorder %v376_v31, 0.0  ;;  %vm385_vm6 = vcmp.ge.f32.partialorder %v377_v40, 0.0  ;;  %vm386_vm7 = vcmp.ge.f32.partialorder %v378_v41, 0.0 }
 0x1b9   : > { %v379_v46 = vmul.f32 %v371_v25, %v363_v42  ;;  %v380_v47 = vmul.f32 %v372_v38, %v364_v43  ;;  %v381_v48 = vmul.f32 %v373_v26, %v365_v44  ;;  %v382_v49 = vmul.f32 %v374_v39, %v366_v45 }
 0x1ba   : > { %v391_v50 = vsel %vm383_vm4, %v359_v29, 0.0  ;;  %v392_v51 = vsel %vm384_vm5, %v360_v30, 0.0  ;;  %v393_v52 = vsel %vm385_vm6, %v361_v32, 0.0  ;;  %v394_v53 = vsel %vm386_vm7, %v362_v33, 0.0 }
 0x1bb   : > { %vm387_vm8 = vcmp.ge.f32.partialorder %v379_v46, 0.0  ;;  %vm388_vm9 = vcmp.ge.f32.partialorder %v380_v47, 0.0  ;;  %vm389_vm10 = vcmp.ge.f32.partialorder %v381_v48, 0.0  ;;  %vm390_vm11 = vcmp.ge.f32.partialorder %v382_v49, 0.0 }
 0x1bc   : > { %v395_v54 = vsel %vm387_vm8, %v363_v42, 0.0  ;;  %v396_v55 = vsel %vm388_vm9, %v364_v43, 0.0  ;;  %v397_v56 = vsel %vm389_vm10, %v365_v44, 0.0  ;;  %v398_v57 = vsel %vm390_vm11, %v366_v45, 0.0 }
 0x1bd   : > { %v399_v58 = vsub.f32 %v359_v29, %v391_v50  ;;  %v400_v59 = vsub.f32 %v360_v30, %v392_v51  ;;  %v401_v60 = vsub.f32 %v361_v32, %v393_v52  ;;  %v402_v61 = vsub.f32 %v362_v33, %v394_v53 }
 0x1be   : > { %v403_v62 = vsub.f32 %v363_v42, %v395_v54  ;;  %v404_v63 = vsub.f32 %v364_v43, %v396_v55  ;;  %v405_v0 = vsub.f32 %v365_v44, %v397_v56  ;;  %v406_v1 = vsub.f32 %v366_v45, %v398_v57 }
 0x1bf   : > { %v411_v2 = vadd.f32 %v399_v58, %v395_v54  ;;  %v412_v3 = vadd.f32 %v400_v59, %v396_v55  ;;  %v413_v4 = vadd.f32 %v401_v60, %v397_v56  ;;  %v414_v5 = vadd.f32 %v402_v61, %v398_v57 }
 0x1c0   : > { %v407_v6 = vadd.f32 %v403_v62, %v391_v50  ;;  %v408_v7 = vadd.f32 %v404_v63, %v392_v51  ;;  %v409_v8 = vadd.f32 %v405_v0, %v393_v52  ;;  %v410_v9 = vadd.f32 %v406_v1, %v394_v53 }
 0x1c1   : > { %419 = vst [vmem:[%s259_s23 + $0x20] sm:$0xff] %v411_v2  ;;  %420 = vst [vmem:[%s259_s23 + $0x28] sm:$0xff] %v412_v3 }
 0x1c2   : > { %421 = vst [vmem:[%s259_s23 + $0x30] sm:$0xff] %v413_v4  ;;  %422 = vst [vmem:[%s259_s23 + $0x38] sm:$0xff] %v414_v5 }
 0x1c3   : > { %415 = vst [vmem:[%s259_s23] sm:$0xff] %v407_v6  ;;  %416 = vst [vmem:[%s259_s23 + $0x8] sm:$0xff] %v408_v7 }
 0x1c4   : > { %417 = vst [vmem:[%s259_s23 + $0x10] sm:$0xff] %v409_v8  ;;  %418 = vst [vmem:[%s259_s23 + $0x18] sm:$0xff] %v410_v9 }
 0x1c5   : > { %769 = shalt.err (!%p766_p10)
}
 0x1c6   : > { %s770_s9 = scalar_lea.hbm %s1050_s19, 1024  ;;  %s774_s26 = scalar_lea.hbm %s1099_s4, 2048 }
 0x1c7   : > { %p771_p6 = scmp.ne.s32.totalorder %s1050_s19, %s770_s9  ;;  %p775_p3 = scmp.lt.s32.totalorder %s1050_s19, %s1099_s4 }
 0x1c8   : > { %p776_p11 = scmp.lt.s32.totalorder %s774_s26, %s770_s9 }
 0x1c9   : > { %p772_p4 = pnand %p771_p6, %p1116_p1 }
 0x1ca   : > { %p777_p5 = por %p776_p11, %p775_p3 }
 0x1cb   : > { %p773_p8 = pneg %p772_p4 }
 0x1cd   : > { %p778_p7 = pnand %p777_p5, %p773_p8 }
 0x1cf   : > { %781 = shalt.err (!%p778_p7)
}
 0x1d0   : > { %s837_s21 = smov 512   ;;  %s838_s23 = smov 32  }
 0x1d1   : > { %575 = dma.vmem_to_hbm [thread:$0]  (%p1116_p1), %s1052_s6, 1024, %s1050_s19, %s424_s12, %s837_s21, %s837_s21, %s838_s23  }
 0x1d2 PF: > { %s452_s7 = sand.u32 1, %s816_s15   ;;  %p1117_p12 = scmp.ne.s32.totalorder %s1105_s22, 0 }
 0x1d3   : > { %p1118_p9 = scmp.ge.s32.totalorder %s828_s18, 2  ;;  %s453_s10 = scalar_lea.sflag [#allocation4], %s452_s7 }
 0x1d5   : > { %p592_p13 = pnand %p1118_p9, %p1117_p12 }
 0x1d7   : > { %p593_p0 = pneg %p592_p13 }
 0x1d9   : > { %811 = dma.done.wait (%p593_p0), %s453_s10, 1024  }
 0x1da   : > { %813 = vsyncadd (%p593_p0), %s453_s10, 4294966272  ;;  %p19_p2 = scmp.ge.s32.totalorder %s953_s24, 4   ;;  %s1119_s15 = smov %s820_s16 }
 0x1db   : > { %s1120_s16 = smov %s824_s17  ;;  %s1121_s17 = smov %s963_s27 }
 0x1dc   : > { %s1122_s18 = smov %s953_s24  ;;  %21 = sbr.rel (!%p19_p2) target bundleno = 7 (0x7), region = 93 }
 0x1e1   :  { %458 = vsyncpa [#allocation3], 1 }
 0x1e2   :  { %460 = vsyncpa [#allocation3 + $0x1], 1 }
 0x1e3   :  { %461 = vsyncpa [#allocation6], 1 }
 0x1e4   :  { %462 = vsyncpa [#allocation9], 1 }
 0x1e5   :  { %463 = vsyncpa [#allocation4], 1 }
 0x1e6   :  { %465 = vsyncpa [#allocation4 + $0x1], 1 }

</bundles_post_ra>
